<compile_context>
chip_gen: v7x
topology: tpu7x:2x2x1
jax: 0.10.0
libtpu: 0.0.40
codegen_flags: <defaults>
</compile_context>

<pallas_src>
import jax
import jax.numpy as jnp
from jax.experimental import pallas as pl
from jax.experimental.pallas import tpu as pltpu


def mapnet_kernel(xT_ref, w1_ref, b1_ref, w2_ref, b2_ref, w3_ref, b3_ref, o_ref):
    xT = xT_ref[...]            # (4, TB) f32
    w1 = w1_ref[...]            # (64, 4) f32

    # fc1 + relu on the VPU: h1[o, b] = sum_k w1[o, k] * xT[k, b] + b1[o]
    h1 = b1_ref[...]            # (64, 1) -> broadcasts to (64, TB)
    for k in range(4):
        h1 = h1 + w1[:, k:k + 1] * xT[k:k + 1, :]
    h1 = jnp.maximum(h1, 0.0)   # (64, TB) f32

    # fc2 + relu on the MXU (bf16 operands, f32 accumulate, f32 elementwise)
    h2 = jnp.dot(w2_ref[...].astype(jnp.bfloat16),
                 h1.astype(jnp.bfloat16),
                 preferred_element_type=jnp.float32)
    h2 = jnp.maximum(h2 + b2_ref[...], 0.0)   # (64, TB) f32

    # fc3 (no activation)
    out = jnp.dot(w3_ref[...].astype(jnp.bfloat16),
                  h2.astype(jnp.bfloat16),
                  preferred_element_type=jnp.float32)
    o_ref[...] = (out + b3_ref[...]).astype(o_ref.dtype)   # (2, TB)


def _round_up(n, m):
    return ((n + m - 1) // m) * m


def mapnet_forward(x, params, tile_b=512):
    """x: (B, 4) f32.  params: PyTorch-layout (out,in) weights, (out,1) biases."""
    w1, b1, w2, b2, w3, b3 = params
    B = x.shape[0]

    # Keep lane tiles a multiple of 128; don't over-pad tiny batches.
    tile_b = min(tile_b, _round_up(B, 128))
    B_pad = _round_up(B, tile_b)
    grid = (B_pad // tile_b,)

    # Batch-on-lanes: transpose once outside and zero-pad the ragged tail.
    xT = jnp.pad(x.T, ((0, 0), (0, B_pad - B)))   # (4, B_pad)

    flops = 2 * B_pad * (4 * 64 + 64 * 64 + 64 * 2)
    weight_bytes = 4 * (64 * 4 + 64 + 64 * 64 + 64 + 2 * 64 + 2)
    bytes_accessed = 4 * B_pad * (4 + 2) + weight_bytes

    resident = lambda a: pl.BlockSpec(a.shape, lambda i: (0,) * a.ndim)

    outT = pl.pallas_call(
        mapnet_kernel,
        out_shape=jax.ShapeDtypeStruct((2, B_pad), jnp.float32),
        grid=grid,
        in_specs=[
            pl.BlockSpec((4, tile_b), lambda i: (0, i)),   # xT, tiled over batch
            resident(w1), resident(b1),
            resident(w2), resident(b2),
            resident(w3), resident(b3),
        ],
        out_specs=pl.BlockSpec((2, tile_b), lambda i: (0, i)),
        compiler_params=pltpu.CompilerParams(
            dimension_semantics=("parallel",)),
        cost_estimate=pl.CostEstimate(
            flops=flops, transcendentals=0, bytes_accessed=bytes_accessed),
    )(xT, w1, b1, w2, b2, w3, b3)

    return outT[:, :B].T   # (B, 2)


def init_params(key):
    """Deterministic init mirroring MapNet.__init__.

    fc1/fc2: PyTorch default U(-1/sqrt(fan_in), 1/sqrt(fan_in)); fc3 weight
    ~ N(0, 0.001), bias 0.  Weights kept in (out, in) layout, biases (out, 1).
    """
    k1, k2, k3, kb1, kb2 = jax.random.split(key, 5)

    def linear_init(kw, kb, fan_in, fan_out):
        bound = 1.0 / jnp.sqrt(fan_in)
        w = jax.random.uniform(kw, (fan_out, fan_in), jnp.float32, -bound, bound)
        b = jax.random.uniform(kb, (fan_out, 1), jnp.float32, -bound, bound)
        return w, b

    w1, b1 = linear_init(k1, kb1, 4, 64)
    w2, b2 = linear_init(k2, kb2, 64, 64)
    w3 = 0.001 * jax.random.normal(k3, (2, 64), jnp.float32)
    b3 = jnp.zeros((2, 1), jnp.float32)
    return (w1, b1, w2, b2, w3, b3)


if __name__ == "__main__":
    key = jax.random.PRNGKey(0)
    kx, kp = jax.random.split(key)

    B = 8
    x = jax.random.normal(kx, (B, 4), jnp.float32)
    params = init_params(kp)

    out = mapnet_forward(x, params)
    out = jax.block_until_ready(out)

    # pure-JAX f32 reference (kernel uses bf16 MXU operands -> loose tol)
    w1, b1, w2, b2, w3, b3 = params
    ref = jnp.maximum(x @ w1.T + b1.T, 0.0)
    ref = jnp.maximum(ref @ w2.T + b2.T, 0.0)
    ref = ref @ w3.T + b3.T

    assert out.shape == (B, 2)
    assert jnp.allclose(out, ref, rtol=2e-2, atol=1e-2), "mismatch vs JAX reference"

    print("KERNEL_OK")
</pallas_src>

<mosaic_0001>
module attributes {stable_mosaic.version = 11 : i64} {
  func.func @mapnet_kernel(%arg0: i32, %arg1: memref<4x128xf32, #tpu.memory_space<vmem>>, %arg2: memref<64x4xf32, #tpu.memory_space<vmem>>, %arg3: memref<64x1xf32, #tpu.memory_space<vmem>>, %arg4: memref<64x64xf32, #tpu.memory_space<vmem>>, %arg5: memref<64x1xf32, #tpu.memory_space<vmem>>, %arg6: memref<2x64xf32, #tpu.memory_space<vmem>>, %arg7: memref<2x1xf32, #tpu.memory_space<vmem>>, %arg8: memref<2x128xf32, #tpu.memory_space<vmem>>) attributes {dimension_semantics = [#tpu.dimension_semantics<parallel>], iteration_bounds = array<i64: 1>, scalar_prefetch = 0 : i64, scratch_operands = 0 : i64, tpu.core_type = #tpu.core_type<tc>, window_params = [{transform_indices = @transform_0, window_bounds = array<i64: 4, 128>}, {pipeline_mode = #tpu.pipeline_mode<synchronous>, transform_indices = @transform_1, window_bounds = array<i64: 64, 4>}, {pipeline_mode = #tpu.pipeline_mode<synchronous>, transform_indices = @transform_2, window_bounds = array<i64: 64, 1>}, {pipeline_mode = #tpu.pipeline_mode<synchronous>, transform_indices = @transform_3, window_bounds = array<i64: 64, 64>}, {pipeline_mode = #tpu.pipeline_mode<synchronous>, transform_indices = @transform_4, window_bounds = array<i64: 64, 1>}, {pipeline_mode = #tpu.pipeline_mode<synchronous>, transform_indices = @transform_5, window_bounds = array<i64: 2, 64>}, {pipeline_mode = #tpu.pipeline_mode<synchronous>, transform_indices = @transform_6, window_bounds = array<i64: 2, 1>}, {transform_indices = @transform_7, window_bounds = array<i64: 2, 128>}]} {
    %c0 = arith.constant 0 : index
    %c0_0 = arith.constant 0 : index
    %0 = vector.load %arg1[%c0, %c0_0] : memref<4x128xf32, #tpu.memory_space<vmem>>, vector<4x128xf32>
    %c0_1 = arith.constant 0 : index
    %c0_2 = arith.constant 0 : index
    %1 = vector.load %arg2[%c0_1, %c0_2] : memref<64x4xf32, #tpu.memory_space<vmem>>, vector<64x4xf32>
    %c0_3 = arith.constant 0 : index
    %c0_4 = arith.constant 0 : index
    %2 = vector.load %arg3[%c0_3, %c0_4] : memref<64x1xf32, #tpu.memory_space<vmem>>, vector<64x1xf32>
    %3 = vector.extract_strided_slice %1 {offsets = [0, 0], sizes = [64, 1], strides = [1, 1]} : vector<64x4xf32> to vector<64x1xf32>
    %4 = vector.extract_strided_slice %0 {offsets = [0, 0], sizes = [1, 128], strides = [1, 1]} : vector<4x128xf32> to vector<1x128xf32>
    %5 = vector.broadcast %3 : vector<64x1xf32> to vector<64x128xf32>
    %6 = vector.broadcast %4 : vector<1x128xf32> to vector<64x128xf32>
    %7 = arith.mulf %5, %6 : vector<64x128xf32>
    %8 = vector.broadcast %2 : vector<64x1xf32> to vector<64x128xf32>
    %9 = arith.addf %8, %7 : vector<64x128xf32>
    %10 = vector.extract_strided_slice %1 {offsets = [0, 1], sizes = [64, 1], strides = [1, 1]} : vector<64x4xf32> to vector<64x1xf32>
    %11 = vector.extract_strided_slice %0 {offsets = [1, 0], sizes = [1, 128], strides = [1, 1]} : vector<4x128xf32> to vector<1x128xf32>
    %12 = vector.broadcast %10 : vector<64x1xf32> to vector<64x128xf32>
    %13 = vector.broadcast %11 : vector<1x128xf32> to vector<64x128xf32>
    %14 = arith.mulf %12, %13 : vector<64x128xf32>
    %15 = arith.addf %9, %14 : vector<64x128xf32>
    %16 = vector.extract_strided_slice %1 {offsets = [0, 2], sizes = [64, 1], strides = [1, 1]} : vector<64x4xf32> to vector<64x1xf32>
    %17 = vector.extract_strided_slice %0 {offsets = [2, 0], sizes = [1, 128], strides = [1, 1]} : vector<4x128xf32> to vector<1x128xf32>
    %18 = vector.broadcast %16 : vector<64x1xf32> to vector<64x128xf32>
    %19 = vector.broadcast %17 : vector<1x128xf32> to vector<64x128xf32>
    %20 = arith.mulf %18, %19 : vector<64x128xf32>
    %21 = arith.addf %15, %20 : vector<64x128xf32>
    %22 = vector.extract_strided_slice %1 {offsets = [0, 3], sizes = [64, 1], strides = [1, 1]} : vector<64x4xf32> to vector<64x1xf32>
    %23 = vector.extract_strided_slice %0 {offsets = [3, 0], sizes = [1, 128], strides = [1, 1]} : vector<4x128xf32> to vector<1x128xf32>
    %24 = vector.broadcast %22 : vector<64x1xf32> to vector<64x128xf32>
    %25 = vector.broadcast %23 : vector<1x128xf32> to vector<64x128xf32>
    %26 = arith.mulf %24, %25 : vector<64x128xf32>
    %27 = arith.addf %21, %26 : vector<64x128xf32>
    %cst = arith.constant 0.000000e+00 : f32
    %28 = vector.broadcast %cst : f32 to vector<64x128xf32>
    %29 = arith.maximumf %27, %28 : vector<64x128xf32>
    %c0_5 = arith.constant 0 : index
    %c0_6 = arith.constant 0 : index
    %30 = vector.load %arg4[%c0_5, %c0_6] : memref<64x64xf32, #tpu.memory_space<vmem>>, vector<64x64xf32>
    %31 = arith.truncf %30 : vector<64x64xf32> to vector<64x64xbf16>
    %32 = arith.truncf %29 : vector<64x128xf32> to vector<64x128xbf16>
    %cst_7 = arith.constant dense<0.000000e+00> : vector<64x128xf32>
    %33 = tpu.matmul %31, %32, %cst_7 {dimension_numbers = #tpu.dot_dimension_numbers<[1], [0], [0], [1], [0, 0, 1, 1], [], []>} : vector<64x64xbf16>, vector<64x128xbf16>, vector<64x128xf32> -> vector<64x128xf32>
    %c0_8 = arith.constant 0 : index
    %c0_9 = arith.constant 0 : index
    %34 = vector.load %arg5[%c0_8, %c0_9] : memref<64x1xf32, #tpu.memory_space<vmem>>, vector<64x1xf32>
    %35 = vector.broadcast %34 : vector<64x1xf32> to vector<64x128xf32>
    %36 = arith.addf %33, %35 : vector<64x128xf32>
    %cst_10 = arith.constant 0.000000e+00 : f32
    %37 = vector.broadcast %cst_10 : f32 to vector<64x128xf32>
    %38 = arith.maximumf %36, %37 : vector<64x128xf32>
    %c0_11 = arith.constant 0 : index
    %c0_12 = arith.constant 0 : index
    %39 = vector.load %arg6[%c0_11, %c0_12] : memref<2x64xf32, #tpu.memory_space<vmem>>, vector<2x64xf32>
    %40 = arith.truncf %39 : vector<2x64xf32> to vector<2x64xbf16>
    %41 = arith.truncf %38 : vector<64x128xf32> to vector<64x128xbf16>
    %cst_13 = arith.constant dense<0.000000e+00> : vector<2x128xf32>
    %42 = tpu.matmul %40, %41, %cst_13 {dimension_numbers = #tpu.dot_dimension_numbers<[1], [0], [0], [1], [0, 0, 1, 1], [], []>} : vector<2x64xbf16>, vector<64x128xbf16>, vector<2x128xf32> -> vector<2x128xf32>
    %c0_14 = arith.constant 0 : index
    %c0_15 = arith.constant 0 : index
    %43 = vector.load %arg7[%c0_14, %c0_15] : memref<2x1xf32, #tpu.memory_space<vmem>>, vector<2x1xf32>
    %44 = vector.broadcast %43 : vector<2x1xf32> to vector<2x128xf32>
    %45 = arith.addf %42, %44 : vector<2x128xf32>
    %c0_16 = arith.constant 0 : index
    %c0_17 = arith.constant 0 : index
    %46 = vector.load %arg8[%c0_16, %c0_17] : memref<2x128xf32, #tpu.memory_space<vmem>>, vector<2x128xf32>
    tpu.vector_store %arg8[%c0_16, %c0_17], %45 {strides = array<i32>} : memref<2x128xf32, #tpu.memory_space<vmem>>, vector<2x128xf32>,
    return
  }
  func.func @transform_0(%arg0: i32) -> (i32, i32) {
    %c0_i32 = arith.constant 0 : i32
    %c0_i32_0 = arith.constant 0 : i32
    return %c0_i32, %arg0 : i32, i32
  }
  func.func @transform_1(%arg0: i32) -> (i32, i32) {
    %c0_i32 = arith.constant 0 : i32
    %c0_i32_0 = arith.constant 0 : i32
    %c0_i32_1 = arith.constant 0 : i32
    return %c0_i32, %c0_i32_0 : i32, i32
  }
  func.func @transform_2(%arg0: i32) -> (i32, i32) {
    %c0_i32 = arith.constant 0 : i32
    %c0_i32_0 = arith.constant 0 : i32
    %c0_i32_1 = arith.constant 0 : i32
    return %c0_i32, %c0_i32_0 : i32, i32
  }
  func.func @transform_3(%arg0: i32) -> (i32, i32) {
    %c0_i32 = arith.constant 0 : i32
    %c0_i32_0 = arith.constant 0 : i32
    %c0_i32_1 = arith.constant 0 : i32
    return %c0_i32, %c0_i32_0 : i32, i32
  }
  func.func @transform_4(%arg0: i32) -> (i32, i32) {
    %c0_i32 = arith.constant 0 : i32
    %c0_i32_0 = arith.constant 0 : i32
    %c0_i32_1 = arith.constant 0 : i32
    return %c0_i32, %c0_i32_0 : i32, i32
  }
  func.func @transform_5(%arg0: i32) -> (i32, i32) {
    %c0_i32 = arith.constant 0 : i32
    %c0_i32_0 = arith.constant 0 : i32
    %c0_i32_1 = arith.constant 0 : i32
    return %c0_i32, %c0_i32_0 : i32, i32
  }
  func.func @transform_6(%arg0: i32) -> (i32, i32) {
    %c0_i32 = arith.constant 0 : i32
    %c0_i32_0 = arith.constant 0 : i32
    %c0_i32_1 = arith.constant 0 : i32
    return %c0_i32, %c0_i32_0 : i32, i32
  }
  func.func @transform_7(%arg0: i32) -> (i32, i32) {
    %c0_i32 = arith.constant 0 : i32
    %c0_i32_0 = arith.constant 0 : i32
    return %c0_i32, %arg0 : i32, i32
  }
}

</mosaic_0001>

<bundles_post_ra>
// kernel: tpu_custom_call.1
= control target key start
LH: loop header
LB: loop body
LE: loop exit
PB: predicated region body
PF: predicated region fallthrough
CT: control target
= control target key end

     0   :  { %v631_v2 = vmov 2   ;;  %v632_v3 = vmov 0   ;;  %s870_s0 = inlined_call_operand.vmem [shape: f32[4,128], index: 0, kind: input, shape index: {}]   ;;  %s871_s1 = inlined_call_operand.vmem [shape: f32[64,4], index: 1, kind: input, shape index: {}]   ;;  %s872_s2 = inlined_call_operand.vmem [shape: f32[64,1], index: 2, kind: input, shape index: {}]   ;;  %s873_s3 = inlined_call_operand.vmem [shape: f32[64,64], index: 3, kind: input, shape index: {}]   ;;  %s874_s4 = inlined_call_operand.vmem [shape: f32[64,1], index: 4, kind: input, shape index: {}]   ;;  %s875_s5 = inlined_call_operand.vmem [shape: f32[2,64], index: 5, kind: input, shape index: {}]   ;;  %s876_s6 = inlined_call_operand.vmem [shape: f32[2,1], index: 6, kind: input, shape index: {}]   ;;  %s877_s7 = inlined_call_operand.hbm [shape: f32[2,128], index: 7, kind: output, shape index: {}]  }
   0x1   :  { %v37_v0 = vld [vmem:[%s872_s2] sm:$0xff]  ;;  %v31_v1 = vld [vmem:[%s871_s1 + $0x10] sm:$0xff]  ;;  %590 = vset.pattern.permute.xlu0 %v631_v2  ;;  %582 = vset.pattern.permute.xlu1 %v632_v3  ;;  %v38_v4 = vld [vmem:[%s872_s2 + $0x8] sm:$0xff] }
   0x2   :  { %99 = vperm.xlu1 %582, %v37_v0   ;;  %206 = vperm.xlu0 %590, %v31_v1   ;;  %v29_v5 = vld [vmem:[%s871_s1] sm:$0xff] }
   0x3   :  { %12 = vsyncpa [#allocation3], 0  ;;  %v30_v6 = vld [vmem:[%s871_s1 + $0x8] sm:$0xff]  ;;  %v633_v7 = vmov 1   ;;  %v32_v8 = vld [vmem:[%s871_s1 + $0x18] sm:$0xff]  ;;  %v634_v14 = vmov 3   ;;  %v85_v40 = vlaneseq }
   0x4   :  { %v39_v9 = vld [vmem:[%s872_s2 + $0x10] sm:$0xff]  ;;  %v42_v10 = vld [vmem:[%s872_s2 + $0x28] sm:$0xff]  ;;  %v36_v11 = vld [vmem:[%s871_s1 + $0x38] sm:$0xff]  ;;  %vm373_vm0 = vcmask 523264   ;;  %vm636_vm1 = vmmov 0   ;;  %s637_s17 = smov [#allocation2]  }
   0x5   :  { %v40_v12 = vld [vmem:[%s872_s2 + $0x18] sm:$0xff]  ;;  %v43_v13 = vld [vmem:[%s872_s2 + $0x30] sm:$0xff]  ;;  %v33_v16 = vld [vmem:[%s871_s1 + $0x20] sm:$0xff]  ;;  %v86_v44 = vshrl.u32 %v85_v40, 7  ;;  %s521_s18 = sshll.u32 %s637_s17, 4  ;;  %s522_s18 = int_to_ptr.vmem [resolvable:$true] %s521_s18 }
   0x6   :  { %104 = vperm.xlu1 %582, %v38_v4   ;;  %591 = vset.pattern.permute.xlu0 %v632_v3  ;;  %v35_v15 = vld [vmem:[%s871_s1 + $0x30] sm:$0xff]  ;;  %v34_v17 = vld [vmem:[%s871_s1 + $0x28] sm:$0xff]  ;;  %v41_v18 = vld [vmem:[%s872_s2 + $0x20] sm:$0xff]  ;;  %s607_s19 = scalar_lea.vmem %s522_s18, 32  ;;  %p612_p1 = scmp.lt.s32.totalorder %s522_s18, %s522_s18 }
   0x7   :  { %47 = vperm.xlu0 %591, %v29_v5   ;;  %v44_v19 = vld [vmem:[%s872_s2 + $0x38] sm:$0xff]  ;;  %v309_v20 = vld [vmem:[%s873_s3] sm:$0xff]  ;;  %v310_v21 = vld [vmem:[%s873_s3 + $0x8] sm:$0xff]  ;;  %v87_v47 = vsub.s32 0, %v86_v44  ;;  %v179_v52 = vsub.s32 1, %v86_v44  ;;  %v231_v54 = vsub.s32 2, %v86_v44  ;;  %p608_p0 = scmp.ne.s32.totalorder %s522_s18, %s607_s19  ;;  %p613_p2 = scmp.lt.s32.totalorder %s607_s19, %s607_s19 }
   0x8   :  { %v317_v22 = vpack.c.bf16 %v310_v21, %v309_v20  ;;  %v326_v27 = vld [vmem:[%s874_s4 + $0x8] sm:$0xff]  ;;  %v325_v28 = vld [vmem:[%s874_s4] sm:$0xff]  ;;  %v327_v31 = vld [vmem:[%s874_s4 + $0x10] sm:$0xff]  ;;  %v283_v59 = vsub.s32 3, %v86_v44 }
   0x9   :  { %v328_v32 = vld [vmem:[%s874_s4 + $0x18] sm:$0xff]  ;;  %v329_v34 = vld [vmem:[%s874_s4 + $0x20] sm:$0xff]  ;;  %v330_v35 = vld [vmem:[%s874_s4 + $0x28] sm:$0xff]  ;;  %p614_p3 = por %p613_p2, %p612_p1 }
   0xa   :  { %583 = vset.pattern.permute.xlu1 %v633_v7  ;;  %555 = vmatprep.mubr.msk.bf16.mxu0 %vm373_vm0, %v317_v22  ;;  %v331_v38 = vld [vmem:[%s874_s4 + $0x30] sm:$0xff]  ;;  %v332_v39 = vld [vmem:[%s874_s4 + $0x38] sm:$0xff]  ;;  %v465_v43 = vld [vmem:[%s876_s6] sm:$0x3] }
   0xb   :  { %150 = vperm.xlu1 %583, %v30_v6   ;;  %52 = vperm.xlu0 %591, %v30_v6   ;;  %v28_v48 = vld [vmem:[%s870_s0] sm:$0xf]  ;;  %p615_p4 = pnand %p614_p3, %p608_p0 }
   0xc   :  { %v788_v51 = vrot.slane %v28_v48, %v87_v47  ;;  %v791_v56 = vrot.slane %v28_v48, %v179_v52  ;;  %v794_v60 = vrot.slane %v28_v48, %v231_v54 }
   0xf   :  { %584 = vset.pattern.permute.xlu1 %v632_v3  ;;  %62 = vperm.xlu0 %591, %v32_v8  }
  0x10   :  { %57 = vperm.xlu1 %584, %v31_v1  }
  0x13   :  { %109 = vperm.xlu0 %591, %v39_v9  }
  0x14   :  { %585 = vset.pattern.permute.xlu1 %v631_v2 }
  0x15   :  { %198 = vperm.xlu1 %585, %v29_v5  }
  0x17   :  { %124 = vperm.xlu0 %591, %v42_v10  }
  0x19   :  { %202 = vperm.xlu1 %585, %v30_v6  }
  0x1b   :  { %82 = vperm.xlu0 %591, %v36_v11  }
  0x1d   :  { %586 = vset.pattern.permute.xlu1 %v632_v3 }
  0x1e   :  { %114 = vperm.xlu1 %586, %v40_v12  }
  0x1f   :  { %129 = vperm.xlu0 %591, %v43_v13  }
  0x22   :  { %587 = vset.pattern.permute.xlu1 %v633_v7 }
  0x23   :  { %598 = vset.pattern.permute.xlu0 %v633_v7  ;;  %158 = vperm.xlu1 %587, %v32_v8  }
  0x24   :  { %146 = vperm.xlu0 %598, %v29_v5  }
  0x27   :  { %588 = vset.pattern.permute.xlu1 %v634_v14 }
  0x28   :  { %154 = vperm.xlu0 %598, %v31_v1   ;;  %250 = vperm.xlu1 %588, %v29_v5  }
  0x2c   :  { %170 = vperm.xlu0 %598, %v35_v15   ;;  %589 = vset.pattern.permute.xlu1 %v632_v3 }
  0x2d   :  { %67 = vperm.xlu1 %589, %v33_v16  }
  0x30   :  { %600 = vset.pattern.permute.xlu0 %v634_v14 }
  0x31   :  { %254 = vperm.xlu0 %600, %v30_v6   ;;  %72 = vperm.xlu1 %589, %v34_v17  }
  0x35   :  { %258 = vperm.xlu0 %600, %v31_v1   ;;  %592 = vset.pattern.permute.xlu1 %v631_v2 }
  0x36   :  { %210 = vperm.xlu1 %592, %v32_v8  }
  0x39   :  { %270 = vperm.xlu0 %600, %v34_v17  }
  0x3a   :  { %593 = vset.pattern.permute.xlu1 %v632_v3 }
  0x3b   :  { %119 = vperm.xlu1 %593, %v41_v18  }
  0x3d   :  { %274 = vperm.xlu0 %600, %v35_v15  }
  0x3f   :  { %594 = vset.pattern.permute.xlu1 %v633_v7 }
  0x40   :  { %162 = vperm.xlu1 %594, %v33_v16  }
  0x41   :  { %605 = vset.pattern.permute.xlu0 %v632_v3 }
  0x42   :  { %335 = vperm.xlu0 %605, %v325_v28  }
  0x44   :  { %166 = vperm.xlu1 %594, %v34_v17  }
  0x46   :  { %350 = vperm.xlu0 %605, %v328_v32  }
  0x48   :  { %595 = vset.pattern.permute.xlu1 %v634_v14 }
  0x49   :  { %262 = vperm.xlu1 %595, %v32_v8  }
  0x4a   :  { %360 = vperm.xlu0 %605, %v330_v35  }
  0x4d   :  { %596 = vset.pattern.permute.xlu1 %v632_v3 }
  0x4e   :  { %77 = vperm.xlu1 %596, %v35_v15   ;;  %370 = vperm.xlu0 %605, %v332_v39  }
  0x52   :  { %597 = vset.pattern.permute.xlu1 %v631_v2 }
  0x53   :  { %214 = vperm.xlu1 %597, %v33_v16  }
  0x57   :  { %218 = vperm.xlu1 %597, %v34_v17  }
  0x5b   :  { %599 = vset.pattern.permute.xlu1 %v632_v3 }
  0x5c   :  { %134 = vperm.xlu1 %599, %v44_v19  }
  0x60   :  { %601 = vset.pattern.permute.xlu1 %v633_v7 }
  0x61   :  { %174 = vperm.xlu1 %601, %v36_v11  }
  0x65   :  { %602 = vset.pattern.permute.xlu1 %v634_v14 }
  0x66   :  { %266 = vperm.xlu1 %602, %v33_v16  }
  0x6a   :  { %603 = vset.pattern.permute.xlu1 %v631_v2  ;;  %v797_v2 = vrot.slane %v28_v48, %v283_v59 }
  0x6b   :  { %222 = vperm.xlu1 %603, %v35_v15  }
  0x6f   :  { %226 = vperm.xlu1 %603, %v36_v11  }
  0x73   :  { %604 = vset.pattern.permute.xlu1 %v634_v14 }
  0x74   :  { %278 = vperm.xlu1 %604, %v36_v11  }
  0x78   :  { %606 = vset.pattern.permute.xlu1 %v632_v3 }
  0x79   :  { %340 = vperm.xlu1 %606, %v326_v27  }
  0x7d   :  { %345 = vperm.xlu1 %606, %v327_v31  }
  0x81   :  { %v100_v23 = vpop.permute.xlu1 %99  ;;  %v748_v24 = vpop.permute.xlu0 %206  ;;  %355 = vperm.xlu1 %606, %v329_v34  }
  0x85   :  { %v105_v25 = vpop.permute.xlu1 %104  ;;  %365 = vperm.xlu1 %606, %v331_v38  }
  0x86   :  { %v48_v26 = vpop.permute.xlu0 %47 }
  0x87   :  { %v89_v55 = vmul.f32 %v788_v51, %v48_v26 }
  0x89   :  { %468 = vperm.xlu1 %606, %v465_v43   ;;  %v137_v61 = vadd.f32 %v100_v23, %v89_v55 }
  0x8a   :  { %v151_v29 = vpop.permute.xlu1 %150  ;;  %v53_v30 = vpop.permute.xlu0 %52 }
  0x8b   :  { %v90_v62 = vmul.f32 %v788_v51, %v53_v30  ;;  %v182_v7 = vmul.f32 %v791_v56, %v151_v29  ;;  %v235_v30 = vmul.f32 %v794_v60, %v748_v24 }
  0x8d   :  { %v138_v3 = vadd.f32 %v105_v25, %v90_v62 }
  0x8e   :  { %v762_v33 = vpop.permute.xlu0 %62 }
  0x8f   :  { %v58_v36 = vpop.permute.xlu1 %57  ;;  %v190_v11 = vadd.f32 %v182_v7, %v138_v3  ;;  %v92_v27 = vmul.f32 %v788_v51, %v762_v33 }
  0x90   :  { %v91_v23 = vmul.f32 %v788_v51, %v58_v36 }
  0x92   :  { %v110_v37 = vpop.permute.xlu0 %109 }
  0x93   :  { %v139_v28 = vadd.f32 %v110_v37, %v91_v23 }
  0x94   :  { %v199_v41 = vpop.permute.xlu1 %198 }
  0x95   :  { %v233_v4 = vmul.f32 %v794_v60, %v199_v41 }
  0x96   :  { %v776_v42 = vpop.permute.xlu0 %124 }
  0x98   :  { %v203_v45 = vpop.permute.xlu1 %202 }
  0x99   :  { %v234_v8 = vmul.f32 %v794_v60, %v203_v45 }
  0x9a   :  { %v781_v46 = vpop.permute.xlu0 %82 }
  0x9b   :  { %v242_v14 = vadd.f32 %v234_v8, %v190_v11 }
  0x9d   :  { %v115_v49 = vpop.permute.xlu1 %114 }
  0x9e   :  { %v786_v50 = vpop.permute.xlu0 %129  ;;  %v140_v35 = vadd.f32 %v115_v49, %v92_v27 }
  0xa2   :  { %v159_v53 = vpop.permute.xlu1 %158 }
  0xa3   :  { %v147_v57 = vpop.permute.xlu0 %146  ;;  %v184_v31 = vmul.f32 %v791_v56, %v159_v53 }
  0xa4   :  { %v181_v58 = vmul.f32 %v791_v56, %v147_v57 }
  0xa5   :  { %v192_v39 = vadd.f32 %v184_v31, %v140_v35  ;;  %v312_v35 = vld [vmem:[%s873_s3 + $0x18] sm:$0xff] }
  0xa6   :  { %v189_v1 = vadd.f32 %v181_v58, %v137_v61 }
  0xa7   :  { %v155_v63 = vpop.permute.xlu0 %154  ;;  %v251_v0 = vpop.permute.xlu1 %250 }
  0xa8   :  { %v241_v9 = vadd.f32 %v233_v4, %v189_v1  ;;  %v285_v10 = vmul.f32 %v797_v2, %v251_v0  ;;  %v183_v25 = vmul.f32 %v791_v56, %v155_v63 }
  0xaa   :  { %v293_v15 = vadd.f32 %v285_v10, %v241_v9  ;;  %v191_v32 = vadd.f32 %v183_v25, %v139_v28 }
  0xab   :  { %v171_v5 = vpop.permute.xlu0 %170 }
  0xac   :  { %v68_v6 = vpop.permute.xlu1 %67  ;;  %v301_v18 = vmax.f32 %v293_v15, 0.0  ;;  %v243_v40 = vadd.f32 %v235_v30, %v191_v32  ;;  %v187_v48 = vmul.f32 %v791_v56, %v171_v5 }
  0xad   :  { %v93_v1 = vmul.f32 %v788_v51, %v68_v6 }
  0xb0   :  { %v255_v12 = vpop.permute.xlu0 %254  ;;  %v73_v13 = vpop.permute.xlu1 %72 }
  0xb1   :  { %v286_v16 = vmul.f32 %v797_v2, %v255_v12  ;;  %v94_v58 = vmul.f32 %v788_v51, %v73_v13 }
  0xb3   :  { %v294_v17 = vadd.f32 %v286_v16, %v242_v14  ;;  %v142_v62 = vadd.f32 %v776_v42, %v94_v58 }
  0xb4   :  { %v259_v29 = vpop.permute.xlu0 %258 }
  0xb5   :  { %v302_v19 = vmax.f32 %v294_v17, 0.0  ;;  %v211_v20 = vpop.permute.xlu1 %210  ;;  %v287_v38 = vmul.f32 %v797_v2, %v259_v29 }
  0xb6   :  { %v236_v36 = vmul.f32 %v794_v60, %v211_v20 }
  0xb7   :  { %v321_v21 = vpack.c.bf16 %v302_v19, %v301_v18  ;;  %v295_v43 = vadd.f32 %v287_v38, %v243_v40  ;;  %v96_v19 = vmul.f32 %v788_v51, %v781_v46  ;;  %v313_v38 = vld [vmem:[%s873_s3 + $0x20] sm:$0xff]  ;;  %v315_v40 = vld [vmem:[%s873_s3 + $0x30] sm:$0xff] }
  0xb8   :  { %v244_v44 = vadd.f32 %v236_v36, %v192_v39  ;;  %v271_v0 = vpop.permute.xlu0 %270 }
  0xb9   :  { %547 = vmatprep.subr.bf16.mxu0 %v321_v21  ;;  %v303_v45 = vmax.f32 %v295_v43, 0.0  ;;  %v290_v9 = vmul.f32 %v797_v2, %v271_v0 }
  0xba   :  { %v120_v22 = vpop.permute.xlu1 %119  ;;  %548 = vmatpush3.bf16.msra.mxu0 %v321_v21 }
  0xbb   :  { %v141_v5 = vadd.f32 %v120_v22, %v93_v1 }
  0xbc   :  { %v275_v22 = vpop.permute.xlu0 %274 }
  0xbd   :  { %v291_v28 = vmul.f32 %v797_v2, %v275_v22 }
  0xbf   :  { %v163_v26 = vpop.permute.xlu1 %162 }
  0xc0   :  { %v185_v3 = vmul.f32 %v791_v56, %v163_v26 }
  0xc2   :  { %v193_v10 = vadd.f32 %v185_v3, %v141_v5 }
  0xc3   :  { %v167_v34 = vpop.permute.xlu1 %166 }
  0xc4   :  { %v186_v61 = vmul.f32 %v791_v56, %v167_v34 }
  0xc8   :  { %v263_v41 = vpop.permute.xlu1 %262 }
  0xc9   :  { %v288_v33 = vmul.f32 %v797_v2, %v263_v41  ;;  %v316_v41 = vld [vmem:[%s873_s3 + $0x38] sm:$0xff] }
  0xca   :  { %v320_v43 = vpack.c.bf16 %v316_v41, %v315_v40 }
  0xcb   :  { %v296_v37 = vadd.f32 %v288_v33, %v244_v44  ;;  %v635_v44 = vmov 0.0  }
  0xcc   :  { %563 = vmatprep.subr.bf16.mxu1 %v635_v44  ;;  %571 = vmatprep.mubr.msk.bf16.mxu1 %vm636_vm1, %v635_v44 }
  0xcd   :  { %v304_v47 = vmax.f32 %v296_v37, 0.0  ;;  %v78_v24 = vpop.permute.xlu1 %77  ;;  %v336_v37 = vpop.permute.xlu0 %335 }
  0xce   :  { %v95_v52 = vmul.f32 %v788_v51, %v78_v24 }
  0xcf   :  { %v322_v49 = vpack.c.bf16 %v304_v47, %v303_v45 }
  0xd0   :  { %v143_v53 = vadd.f32 %v786_v50, %v95_v52  ;;  %v194_v50 = vadd.f32 %v186_v61, %v142_v62 }
  0xd1   :  { %549 = vmatprep.subr.bf16.mxu0 %v322_v49  ;;  %v351_v47 = vpop.permute.xlu0 %350 }
  0xd2   :  { %v215_v54 = vpop.permute.xlu1 %214  ;;  %550 = vmatpush3.bf16.msra.mxu0 %v322_v49  ;;  %v195_v55 = vadd.f32 %v187_v48, %v143_v53 }
  0xd3   :  { %v237_v7 = vmul.f32 %v794_v60, %v215_v54 }
  0xd5   :  { %v245_v12 = vadd.f32 %v237_v7, %v193_v10  ;;  %v361_v58 = vpop.permute.xlu0 %360 }
  0xd6   :  { %v219_v57 = vpop.permute.xlu1 %218 }
  0xd7   :  { %v238_v63 = vmul.f32 %v794_v60, %v219_v57 }
  0xd9   :  { %v246_v8 = vadd.f32 %v238_v63, %v194_v50 }
  0xdb   :  { %v135_v59 = vpop.permute.xlu1 %134  ;;  %v298_v13 = vadd.f32 %v290_v9, %v246_v8  ;;  %v371_v8 = vpop.permute.xlu0 %370 }
  0xdc   :  { %v144_v23 = vadd.f32 %v135_v59, %v96_v19 }
  0xdd   :  { %v306_v15 = vmax.f32 %v298_v13, 0.0 }
  0xe0   :  { %v175_v4 = vpop.permute.xlu1 %174 }
  0xe1   :  { %v188_v20 = vmul.f32 %v791_v56, %v175_v4  ;;  %v311_v56 = vld [vmem:[%s873_s3 + $0x10] sm:$0xff] }
  0xe2   :  { %v318_v36 = vpack.c.bf16 %v312_v35, %v311_v56 }
  0xe3   :  { %v196_v27 = vadd.f32 %v188_v20, %v144_v23 }
  0xe5   :  { %v267_v11 = vpop.permute.xlu1 %266 }
  0xe6   :  { %v289_v42 = vmul.f32 %v797_v2, %v267_v11 }
  0xe8   :  { %v297_v14 = vadd.f32 %v289_v42, %v245_v12 }
  0xea   :  { %v305_v16 = vmax.f32 %v297_v14, 0.0  ;;  %v223_v6 = vpop.permute.xlu1 %222 }
  0xeb   :  { %v239_v17 = vmul.f32 %v794_v60, %v223_v6 }
  0xec   :  { %v323_v18 = vpack.c.bf16 %v306_v15, %v305_v16 }
  0xed   :  { %v247_v25 = vadd.f32 %v239_v17, %v195_v55 }
  0xee   :  { %v227_v21 = vpop.permute.xlu1 %226  ;;  %551 = vmatprep.subr.bf16.mxu0 %v323_v18 }
  0xef   :  { %552 = vmatpush3.bf16.msra.mxu0 %v323_v18  ;;  %v240_v26 = vmul.f32 %v794_v60, %v227_v21  ;;  %v299_v30 = vadd.f32 %v291_v28, %v247_v25  ;;  %v459_v18 = vld [vmem:[%s875_s5] sm:$0x3] }
  0xf0   :  { %v460_v19 = vpack.c.bf16 %v459_v18, %v459_v18 }
  0xf1   :  { %v248_v31 = vadd.f32 %v240_v26, %v196_v27  ;;  %v307_v46 = vmax.f32 %v299_v30, 0.0 }
  0xf3   :  { %v279_v29 = vpop.permute.xlu1 %278 }
  0xf4   :  { %v292_v32 = vmul.f32 %v797_v2, %v279_v29  ;;  %v314_v2 = vld [vmem:[%s873_s3 + $0x28] sm:$0xff] }
  0xf5   :  { %v319_v39 = vpack.c.bf16 %v314_v2, %v313_v38 }
  0xf6   :  { %v300_v34 = vadd.f32 %v292_v32, %v248_v31 }
  0xf8   :  { %v308_v51 = vmax.f32 %v300_v34, 0.0  ;;  %v341_v33 = vpop.permute.xlu1 %340 }
  0xfa   :  { %v324_v60 = vpack.c.bf16 %v308_v51, %v307_v46 }
  0xfc   :  { %553 = vmatprep.subr.bf16.mxu0 %v324_v60  ;;  %v346_v45 = vpop.permute.xlu1 %345 }
  0xfd   :  { %554 = vmatpush3.bf16.msra.mxu0 %v324_v60 }
 0x100   :  { %556 = vmatmul.mubr.msk.bf16.vlgmr.msra.gmra.mrb[0].mxu0 %vm373_vm0, %v318_v36  ;;  %v356_v49 = vpop.permute.xlu1 %355 }
 0x101   :  { %559 = vmatprep.mubr.msk.bf16.mxu0 %vm373_vm0, %v319_v39 }
 0x104   :  { %v366_v3 = vpop.permute.xlu1 %365 }
 0x108   :  { %560 = vmatmul.mubr.msk.bf16.gmra.mrb[4].mxu0 %vm373_vm0, %v320_v43  ;;  %v469_v20 = vpop.permute.xlu1 %468 }
 0x1d3   :  { %v557_v24 = vpop.f32.mrb[0].mxu0 }
 0x1d4   :  { %v429_v48 = vadd.f32 %v557_v24, %v346_v45  ;;  %v420_v52 = vpop.f32.mrb[1].mxu0 }
 0x1d5   :  { %v421_v53 = vadd.f32 %v420_v52, %v336_v37  ;;  %v558_v54 = vpop.f32.mrb[2].mxu0 }
 0x1d6   :  { %v432_v55 = vadd.f32 %v558_v54, %v351_v47  ;;  %v423_v57 = vpop.f32.mrb[3].mxu0  ;;  %v453_v61 = vmax.f32 %v429_v48, 0.0 }
 0x1d7   :  { %v424_v59 = vadd.f32 %v423_v57, %v341_v33  ;;  %v451_v63 = vmax.f32 %v421_v53, 0.0 }
 0x1d8   :  { %v454_v62 = vmax.f32 %v432_v55, 0.0 }
 0x1d9   :  { %v452_v0 = vmax.f32 %v424_v59, 0.0 }
 0x1da   :  { %v462_v1 = vpack.c.bf16 %v454_v62, %v453_v61 }
 0x1db   :  { %v561_v50 = vpop.f32.mrb[4].mxu0  ;;  %v461_v4 = vpack.c.bf16 %v452_v0, %v451_v63 }
 0x1dc   :  { %v445_v5 = vadd.f32 %v561_v50, %v366_v3  ;;  %v436_v7 = vpop.f32.mrb[5].mxu0 }
 0x1dd   :  { %v437_v9 = vadd.f32 %v436_v7, %v356_v49  ;;  %v562_v10 = vpop.f32.mrb[6].mxu0  ;;  %564 = vmatpush3.bf16.msra.mxu1 %v461_v4 }
 0x1de   :  { %v448_v11 = vadd.f32 %v562_v10, %v371_v8  ;;  %v439_v12 = vpop.f32.mrb[7].mxu0  ;;  %565 = vmatprep.subr.bf16.mxu1 %v635_v44  ;;  %v457_v42 = vmax.f32 %v445_v5, 0.0 }
 0x1df   :  { %v440_v13 = vadd.f32 %v439_v12, %v361_v58  ;;  %v455_v15 = vmax.f32 %v437_v9, 0.0 }
 0x1e0   :  { %v458_v14 = vmax.f32 %v448_v11, 0.0 }
 0x1e1   :  { %v456_v16 = vmax.f32 %v440_v13, 0.0  ;;  %566 = vmatpush3.bf16.msra.mxu1 %v462_v1 }
 0x1e2   :  { %v464_v6 = vpack.c.bf16 %v458_v14, %v457_v42  ;;  %567 = vmatprep.subr.bf16.mxu1 %v635_v44 }
 0x1e3   :  { %v463_v17 = vpack.c.bf16 %v456_v16, %v455_v15 }
 0x1e5   :  { %568 = vmatpush3.bf16.msra.mxu1 %v463_v17 }
 0x1e6   :  { %569 = vmatprep.subr.bf16.mxu1 %v635_v44 }
 0x1e9   :  { %570 = vmatpush3.bf16.msra.mxu1 %v464_v6 }
 0x1ec   :  { %572 = vmatmul.mubr.msk.bf16.vlgmr.msra.gmra.mrb[0].mxu1 %vm373_vm0, %v460_v19 }
 0x2bf   :  { %v508_v21 = vpop.f32.mrb[0].mxu1 }
 0x2c0   :  { %v509_v22 = vadd.f32 %v508_v21, %v469_v20  ;;  %v573_v23 = vpop.f32.mrb[1].mxu1 }
 0x2c1   :  { %v511_v25 = vpop.f32.mrb[2].mxu1 }
 0x2c2   :  { %514 = vst [vmem:[#allocation2] sm:$0x3] %v509_v22  ;;  %v574_v26 = vpop.f32.mrb[3].mxu1 }
 0x2c3   :  { %618 = shalt.err (!%p615_p4)
}
 0x2c4   :  { %s619_s21 = scalar_lea.hbm %s877_s7, 32 }
 0x2c5   :  { %p620_p5 = scmp.ne.s32.totalorder %s877_s7, %s619_s21  ;;  %p623_p6 = scmp.lt.u32.totalorder %s619_s21, %s877_s7 }
 0x2c7   :  { %p625_p7 = pnand %p623_p6, %p620_p5 }
 0x2c9   :  { %628 = shalt.err (!%p625_p7)
}
 0x2ca   :  { %524 = dma.vmem_to_hbm [thread:$0]  %s522_s18, 32, %s877_s7, [#allocation3]  }
 0x2cb   :  { %629 = dma.done.wait [#allocation3], 32  }
 0x2cc   :  { %630 = vsyncadd [#allocation3], 4294967264 }
 0x2cd   :  { %528 = vsyncpa [#allocation3], 1 }

</bundles_post_ra>
